<compile_context>
chip_gen: v6e
topology: v6e:2x2x1
jax: 0.10.0
libtpu: 0.0.40
codegen_flags: <defaults>
</compile_context>

<pallas_src>
import functools
import math

import numpy as np
import jax
import jax.numpy as jnp
from jax.experimental import pallas as pl
from jax.experimental.pallas import tpu as pltpu


def _rope_cache_kernel(scale_ref, phase_ref, cos_ref, sin_ref, *,
                       tile_rows, dup):
    """Fills one (tile_rows, packed_dim) lane-packed tile of the caches.

    scale/phase are trace-time-baked lane constants of shape (1, U):
      emb[r, c] = (global_row r) * scale[c] + phase[c]
    which equals pos * inv_freq[feat % (dim//2)] for the packed layout.
    When dup == 2, only the unique dim/2 columns are evaluated and each
    result is stored twice (the cat((freqs, freqs)) duplication).
    """
    i = pl.program_id(0)
    u = scale_ref.shape[-1]
    rows = cos_ref.shape[0]
    # Global packed-row index: the only dynamic quantity in the kernel.
    r = jax.lax.broadcasted_iota(jnp.int32, (rows, u), 0) + i * tile_rows
    emb = r.astype(jnp.float32) * scale_ref[...] + phase_ref[...]
    c = jnp.cos(emb).astype(cos_ref.dtype)
    s = jnp.sin(emb).astype(sin_ref.dtype)
    for j in range(dup):  # dup == 2 only when both halves stay lane-dense
        cos_ref[:, j * u:(j + 1) * u] = c
        sin_ref[:, j * u:(j + 1) * u] = s


def build_rope_cache(dim, max_position_embeddings=1024, base=10000.0,
                     dtype=jnp.float32):
    """Returns (cos_cached, sin_cached) with shape [1, 1, max_pos, dim]."""
    assert dim % 2 == 0, "rotary dim must be even"
    base = float(base)
    max_pos = int(max_position_embeddings)
    half = dim // 2

    # ---- lane packing: make the packed last dim a multiple of 128 ----------
    k = 128 // math.gcd(dim, 128)        # == lcm(dim, 128) // dim
    if k > 1 and max_pos % k != 0:
        k = 1                            # fallback: masked stores, still correct
    packed_rows = max_pos // k
    packed_dim = k * dim

    # ---- cos/sin halving: only when the duplicated write stays lane-dense --
    dup = 2 if (k == 1 and half % 128 == 0) else 1
    u = packed_dim // dup                # unique lane width evaluated per row

    # ---- trace-time lane constants (numpy): no exp / div / mod in-kernel ---
    inv_freq = 1.0 / (base ** (np.arange(0, dim, 2, dtype=np.float64) / dim))
    lane = np.arange(u)
    if dup == 2:
        h = lane                          # unique half-features only
        g = np.zeros(u)
    else:
        g = lane // dim                   # which packed position within the row
        h = (lane % dim) % half           # cat((inv_freq, inv_freq)) duplication
    scale = jnp.asarray((k * inv_freq[h]).astype(np.float32).reshape(1, u))
    phase = jnp.asarray((g * inv_freq[h]).astype(np.float32).reshape(1, u))

    # ---- tile sizing --------------------------------------------------------
    itemsize = jnp.dtype(dtype).itemsize
    sub = {1: 32, 2: 16}.get(itemsize, 8)          # dtype sublane multiple
    try:
        vmem_cap = int(pltpu.get_tpu_info().vmem_capacity_bytes)
    except Exception:
        vmem_cap = 64 << 20                        # conservative (v7x per-TC)
    # Budget for the double-buffered cos+sin output tiles; the remaining
    # scoped VMEM is headroom for the few f32 elementwise temporaries.
    out_budget = max(4 << 20, vmem_cap // 8)       # 16 MiB v5e/v6e, 8 MiB v7x
    n_buffers = 2                                  # BlockSpec default pipelining

    tile_rows = packed_rows
    while (n_buffers * 2 * tile_rows * packed_dim * itemsize > out_budget
           and tile_rows % 2 == 0 and (tile_rows // 2) % sub == 0):
        tile_rows //= 2

    # Give both v7x TensorCores a tile when the build is big enough to matter
    # (per-step overhead is only ~0.35 us, so splitting tiny builds hurts).
    if (packed_rows // tile_rows == 1
            and 2 * packed_rows * packed_dim * itemsize >= (1 << 20)
            and tile_rows % 2 == 0 and (tile_rows // 2) % sub == 0):
        tile_rows //= 2
    n_tiles = packed_rows // tile_rows

    kernel = functools.partial(_rope_cache_kernel, tile_rows=tile_rows, dup=dup)
    out_sd = jax.ShapeDtypeStruct((packed_rows, packed_dim), dtype)
    const_spec = pl.BlockSpec((1, u), lambda i: (0, 0))
    out_spec = pl.BlockSpec((tile_rows, packed_dim), lambda i: (i, 0))

    cos_p, sin_p = pl.pallas_call(
        kernel,
        out_shape=(out_sd, out_sd),
        grid=(n_tiles,),
        in_specs=[const_spec, const_spec],
        out_specs=(out_spec, out_spec),
        compiler_params=pltpu.CompilerParams(
            dimension_semantics=("parallel",) if n_tiles > 1 else ("arbitrary",),
            vmem_limit_bytes=min(vmem_cap // 2, 64 << 20),
        ),
    )(scale, phase)

    # One-time unpack.  When dim < 128 this is a relayout copy (not free under
    # (8,128) tiled layouts), but it is paid exactly once at init; the hot
    # path slices the memoized [1, 1, max_pos, dim] result.  When k == 1 the
    # kernel already emitted (max_pos, dim) directly and no copy is needed.
    if k > 1:
        cos2d = cos_p.reshape(max_pos, dim)
        sin2d = sin_p.reshape(max_pos, dim)
    else:
        cos2d, sin2d = cos_p, sin_p
    return cos2d[None, None, :, :], sin2d[None, None, :, :]


class RotaryEmbedding:
    """JAX/Pallas equivalent of the PyTorch RotaryEmbedding module."""

    def __init__(self, dim, max_position_embeddings=1024, base=10000,
                 dtype=jnp.float32):
        # Pass the model dtype (e.g. jnp.bfloat16) so the cache is built and
        # stored directly in it: halves init writeback, cache footprint and
        # hot-path slice bandwidth; in-kernel math stays f32 regardless.
        self.dim = dim
        self.max_position_embeddings = max_position_embeddings
        self.base = float(base)
        self.max_seq_len_cached = max_position_embeddings
        self.cos_cached, self.sin_cached = build_rope_cache(
            dim, max_position_embeddings, self.base, dtype=dtype)
        # Memoized per-dtype casts so __call__ (the hot path) is just a slice.
        self._dtype_cache = {
            jnp.dtype(dtype): (self.cos_cached, self.sin_cached)
        }

    def __call__(self, x, seq_len=None):
        dt = jnp.dtype(x.dtype)
        if dt not in self._dtype_cache:
            self._dtype_cache[dt] = (self.cos_cached.astype(dt),
                                     self.sin_cached.astype(dt))
        cos, sin = self._dtype_cache[dt]
        return cos[:, :, :seq_len, ...], sin[:, :, :seq_len, ...]


if __name__ == "__main__":
    dim = 32
    max_pos = 64
    seq_len = 8
    batch, heads = 2, 4

    rope = RotaryEmbedding(dim, max_position_embeddings=max_pos, base=10000)

    key = jax.random.PRNGKey(0)
    x = jax.random.normal(key, (batch, heads, seq_len, dim), dtype=jnp.float32)

    cos, sin = rope(x, seq_len=seq_len)
    cos, sin = jax.block_until_ready((cos, sin))

    # Reference check against plain-JAX math (same as the PyTorch module).
    inv_freq = 1.0 / (10000.0 ** (jnp.arange(0, dim, 2, dtype=jnp.float32) / dim))
    t = jnp.arange(max_pos, dtype=jnp.float32)
    freqs = jnp.einsum("i,j->ij", t, inv_freq)
    emb = jnp.concatenate([freqs, freqs], axis=-1)
    ref_cos = jnp.cos(emb)[None, None, :seq_len, :].astype(x.dtype)
    ref_sin = jnp.sin(emb)[None, None, :seq_len, :].astype(x.dtype)

    assert cos.shape == (1, 1, seq_len, dim) and sin.shape == (1, 1, seq_len, dim)
    assert cos.dtype == x.dtype and sin.dtype == x.dtype
    assert jnp.allclose(cos, ref_cos, atol=1e-4)
    assert jnp.allclose(sin, ref_sin, atol=1e-4)
    print("KERNEL_OK")
</pallas_src>

<mosaic_0001>
module attributes {stable_mosaic.version = 11 : i64} {
  func.func @_rope_cache_kernel(%arg0: i32, %arg1: memref<1x128xf32, #tpu.memory_space<vmem>>, %arg2: memref<1x128xf32, #tpu.memory_space<vmem>>, %arg3: memref<16x128xf32, #tpu.memory_space<vmem>>, %arg4: memref<16x128xf32, #tpu.memory_space<vmem>>) attributes {dimension_semantics = [#tpu.dimension_semantics<arbitrary>], iteration_bounds = array<i64: 1>, scalar_prefetch = 0 : i64, scratch_operands = 0 : i64, tpu.core_type = #tpu.core_type<tc>, window_params = [{pipeline_mode = #tpu.pipeline_mode<synchronous>, transform_indices = @transform_0, window_bounds = array<i64: 1, 128>}, {pipeline_mode = #tpu.pipeline_mode<synchronous>, transform_indices = @transform_1, window_bounds = array<i64: 1, 128>}, {transform_indices = @transform_2, window_bounds = array<i64: 16, 128>}, {transform_indices = @transform_3, window_bounds = array<i64: 16, 128>}]} {
    %0 = tpu.iota {dimensions = array<i32: 0>} : vector<16x128xi32>
    %c16_i32 = arith.constant 16 : i32
    %1 = arith.muli %arg0, %c16_i32 : i32
    %2 = vector.broadcast %1 : i32 to vector<16x128xi32>
    %3 = arith.addi %0, %2 : vector<16x128xi32>
    %4 = arith.sitofp %3 : vector<16x128xi32> to vector<16x128xf32>
    %c0 = arith.constant 0 : index
    %c0_0 = arith.constant 0 : index
    %5 = vector.load %arg1[%c0, %c0_0] : memref<1x128xf32, #tpu.memory_space<vmem>>, vector<1x128xf32>
    %6 = vector.broadcast %5 : vector<1x128xf32> to vector<16x128xf32>
    %7 = arith.mulf %4, %6 : vector<16x128xf32>
    %c0_1 = arith.constant 0 : index
    %c0_2 = arith.constant 0 : index
    %8 = vector.load %arg2[%c0_1, %c0_2] : memref<1x128xf32, #tpu.memory_space<vmem>>, vector<1x128xf32>
    %9 = vector.broadcast %8 : vector<1x128xf32> to vector<16x128xf32>
    %10 = arith.addf %7, %9 : vector<16x128xf32>
    %11 = math.cos %10 : vector<16x128xf32>
    %12 = math.sin %10 : vector<16x128xf32>
    %c0_3 = arith.constant 0 : index
    %c0_4 = arith.constant 0 : index
    %13 = vector.load %arg3[%c0_3, %c0_4] : memref<16x128xf32, #tpu.memory_space<vmem>>, vector<16x128xf32>
    tpu.vector_store %arg3[%c0_3, %c0_4], %11 {strides = array<i32>} : memref<16x128xf32, #tpu.memory_space<vmem>>, vector<16x128xf32>,
    %c0_5 = arith.constant 0 : index
    %c0_6 = arith.constant 0 : index
    %14 = vector.load %arg4[%c0_5, %c0_6] : memref<16x128xf32, #tpu.memory_space<vmem>>, vector<16x128xf32>
    tpu.vector_store %arg4[%c0_5, %c0_6], %12 {strides = array<i32>} : memref<16x128xf32, #tpu.memory_space<vmem>>, vector<16x128xf32>,
    return
  }
  func.func @transform_0(%arg0: i32) -> (i32, i32) {
    %c0_i32 = arith.constant 0 : i32
    %c0_i32_0 = arith.constant 0 : i32
    %c0_i32_1 = arith.constant 0 : i32
    return %c0_i32, %c0_i32_0 : i32, i32
  }
  func.func @transform_1(%arg0: i32) -> (i32, i32) {
    %c0_i32 = arith.constant 0 : i32
    %c0_i32_0 = arith.constant 0 : i32
    %c0_i32_1 = arith.constant 0 : i32
    return %c0_i32, %c0_i32_0 : i32, i32
  }
  func.func @transform_2(%arg0: i32) -> (i32, i32) {
    %c0_i32 = arith.constant 0 : i32
    %c0_i32_0 = arith.constant 0 : i32
    return %arg0, %c0_i32 : i32, i32
  }
  func.func @transform_3(%arg0: i32) -> (i32, i32) {
    %c0_i32 = arith.constant 0 : i32
    %c0_i32_0 = arith.constant 0 : i32
    return %arg0, %c0_i32 : i32, i32
  }
}

</mosaic_0001>

<bundles_post_ra>
// kernel: tpu_custom_call.1
= control target key start
LH: loop header
LB: loop body
LE: loop exit
PB: predicated region body
PF: predicated region fallthrough
CT: control target
= control target key end

     0   :  { %9 = vsyncpa [#allocation3], 0  ;;  %s729_s0 = inlined_call_operand.hbm [shape: f32[1,128], index: 0, kind: input, shape index: {}]   ;;  %s730_s1 = inlined_call_operand.vmem [shape: f32[1,128], index: 1, kind: input, shape index: {}]   ;;  %s731_s2 = inlined_call_operand.hbm [shape: f32[16,128], index: 2, kind: output, shape index: {0}]   ;;  %s732_s3 = inlined_call_operand.hbm [shape: f32[16,128], index: 3, kind: output, shape index: {1}]  }
   0x1   :  { %10 = vsyncpa [#allocation4], 0 }
   0x2   :  { %11 = vsyncpa [#allocation7], 0  ;;  %s616_s12 = smov [#allocation2]  }
   0x3   :  { %s18_s13 = sshll.u32 %s616_s12, 4  ;;  %s19_s13 = int_to_ptr.vmem [resolvable:$true] %s18_s13 }
   0x4   :  { %s558_s14 = scalar_lea.vmem %s19_s13, 16  ;;  %s562_s15 = scalar_lea.vmem %s19_s13, 32 }
   0x5   :  { %p559_p0 = scmp.ne.s32.totalorder %s19_s13, %s558_s14  ;;  %p563_p1 = scmp.lt.s32.totalorder %s19_s13, %s19_s13 }
   0x6   :  { %p564_p2 = scmp.lt.s32.totalorder %s562_s15, %s558_s14 }
   0x8   :  { %p565_p3 = por %p564_p2, %p563_p1 }
   0xa   :  { %p566_p4 = pnand %p565_p3, %p559_p0 }
   0xc   :  { %569 = shalt.err (!%p566_p4)
}
   0xd   :  { %21 = dma.hbm_to_vmem [thread:$0]  %s729_s0, 16, %s19_s13, [#allocation3]  }
   0xe   :  { %610 = dma.done.wait [#allocation3], 16  }
   0xf   :  { %611 = vsyncadd [#allocation3], 4294967280  ;;  %v27_v0 = vlaneseq  ;;  %v505_v5 = vld [vmem:[#allocation2] ss:$0 sm:$0xff]  ;;  %v617_v33 = vmov 683565275  }
  0x10   :  { %v506_v6 = vld [vmem:[%s730_s1] ss:$0 sm:$0xff]  ;;  %v618_v35 = vmov 2475754826   ;;  %v619_v37 = vmov 2131351028  }
  0x11   :  { %v28_v1 = vshrl.u32 %v27_v0, 7  ;;  %v620_v39 = vmov 2102212464   ;;  %v621_v41 = vmov 920167782   ;;  %s623_s0 = smov [#allocation5]  }
  0x12   :  { %v622_v49 = vmov 1326507024   ;;  %s477_s1 = sshll.u32 %s623_s0, 4  ;;  %s624_s20 = smov [#allocation6]   ;;  %s478_s1 = int_to_ptr.vmem [resolvable:$true] %s477_s1 }
  0x13   :  { %v34_v2 = vcvt.s32.f32 %v28_v1  ;;  %v29_v3 = vadd.s32 8, %v28_v1  ;;  %s489_s21 = sshll.u32 %s624_s20, 4  ;;  %s570_s22 = scalar_lea.vmem %s478_s1, 256  ;;  %s490_s21 = int_to_ptr.vmem [resolvable:$true] %s489_s21 }
  0x14   :  { %p571_p5 = scmp.ne.s32.totalorder %s478_s1, %s570_s22  ;;  %p575_p6 = scmp.lt.s32.totalorder %s478_s1, %s478_s1 }
  0x15   :  { %v35_v4 = vcvt.s32.f32 %v29_v3  ;;  %v43_v7 = vmul.f32 %v505_v5, %v34_v2  ;;  %p576_p7 = scmp.lt.s32.totalorder %s570_s22, %s570_s22 }
  0x17   :  { %v44_v8 = vmul.f32 %v505_v5, %v35_v4  ;;  %v653_v9 = vadd.f32 %v506_v6, %v43_v7  ;;  %p577_p8 = por %p576_p7, %p575_p6 }
  0x19   :  { %v655_v10 = vadd.f32 %v506_v6, %v44_v8  ;;  %v54_v11 = vand.u32 2147483647, %v653_v9  ;;  %v57_v12 = vand.u32 2139095040, %v653_v9  ;;  %vm56_vm14 = vcmp.lt.s32.totalorder %v653_v9, 0  ;;  %p578_p9 = pnand %p577_p8, %p571_p5 }
  0x1b   :  { %v157_v13 = vand.u32 2147483647, %v655_v10  ;;  %v160_v14 = vand.u32 2139095040, %v655_v10  ;;  %v58_v15 = vshrl.u32 %v57_v12, 23  ;;  %v61_v16 = vand.u32 8388607, %v54_v11 }
  0x1c   :  { %vm55_vm15 = vcmp.le.f32.partialorder %v54_v11, 0.7853982 }
  0x1d   :  { %v161_v17 = vshrl.u32 %v160_v14, 23  ;;  %v164_v18 = vand.u32 8388607, %v157_v13  ;;  %v507_v19 = vadd.s32 4294967169, %v58_v15  ;;  %v62_v22 = vor.u32 8388608, %v61_v16 }
  0x1f   :  { %v511_v20 = vadd.s32 4294967169, %v161_v17  ;;  %v64_v21 = vadd.s32 1, %v507_v19  ;;  %v165_v23 = vor.u32 8388608, %v164_v18  ;;  %v665_v29 = vshll.u32 %v62_v22, 8 }
  0x21   :  { %v167_v24 = vadd.s32 1, %v511_v20  ;;  %vm65_vm0 = vcmp.gt.s32.totalorder %v64_v21, 0  ;;  %v667_v31 = vshll.u32 %v165_v23, 8 }
  0x22   :  { %v66_v25 = vsel %vm65_vm0, %v64_v21, 0  ;;  %vm159_vm0 = vcmp.lt.s32.totalorder %v655_v10, 0 }
  0x23   :  { %vm168_vm1 = vcmp.gt.s32.totalorder %v167_v24, 0  ;;  %v67_v26 = vshrl.u32 %v66_v25, 5  ;;  %v68_v27 = vand.u32 31, %v66_v25 }
  0x24   :  { %v169_v28 = vsel %vm168_vm1, %v167_v24, 0  ;;  %vm158_vm1 = vcmp.le.f32.partialorder %v157_v13, 0.7853982 }
  0x25   :  { %v171_v30 = vand.u32 31, %v169_v28  ;;  %v69_v32 = vsub.s32 32, %v68_v27  ;;  %v71_v34 = vshll.u32 %v617_v33, %v68_v27  ;;  %v74_v36 = vshll.u32 %v618_v35, %v68_v27 }
  0x26   :  { %v77_v38 = vshll.u32 %v619_v37, %v68_v27  ;;  %v80_v40 = vshll.u32 %v620_v39, %v68_v27  ;;  %v83_v42 = vshll.u32 %v621_v41, %v68_v27  ;;  %vm86_vm2 = vcmp.lt.s32.totalorder %v67_v26, 1 }
  0x27   :  { %v669_v43 = vshrl.u32 %v169_v28, 5  ;;  %v70_v44 = vshrl.u32 %v617_v33, %v69_v32  ;;  %v72_v45 = vshrl.u32 %v618_v35, %v69_v32  ;;  %v75_v46 = vshrl.u32 %v619_v37, %v69_v32 }
  0x28   :  { %v78_v47 = vshrl.u32 %v620_v39, %v69_v32  ;;  %v81_v48 = vshrl.u32 %v621_v41, %v69_v32  ;;  %v84_v50 = vshrl.u32 %v622_v49, %v69_v32  ;;  %vm87_vm3 = vcmp.lt.s32.totalorder %v67_v26, 2 }
  0x29   :  { %vm89_vm4 = vcmp.lt.s32.totalorder %v67_v26, 4  ;;  %v73_v51 = vor.u32 %v72_v45, %v71_v34  ;;  %v76_v52 = vor.u32 %v75_v46, %v74_v36  ;;  %v172_v54 = vsub.s32 32, %v171_v30 }
  0x2a   :  { %v79_v53 = vor.u32 %v78_v47, %v77_v38  ;;  %v82_v55 = vor.u32 %v81_v48, %v80_v40  ;;  %v85_v56 = vor.u32 %v84_v50, %v83_v42  ;;  %vm88_vm5 = vcmp.lt.s32.totalorder %v67_v26, 3 }
  0x2b   :  { %v174_v57 = vshll.u32 %v617_v33, %v171_v30  ;;  %v90_v58 = vsel %vm86_vm2, %v70_v44, %v73_v51  ;;  %v94_v60 = vsel %vm86_vm2, %v73_v51, %v76_v52  ;;  %v177_v1 = vshll.u32 %v618_v35, %v171_v30 }
  0x2c   :  { %v91_v59 = vsel %vm89_vm4, %v79_v53, 2102212464  ;;  %v98_v61 = vsel %vm86_vm2, %v76_v52, %v79_v53  ;;  %v95_v63 = vsel %vm89_vm4, %v82_v55, 920167782  ;;  %v99_v0 = vsel %vm89_vm4, %v85_v56, 1326507024 }
  0x2d   :  { %v92_v62 = vsel %vm88_vm5, %v76_v52, %v91_v59  ;;  %v96_v2 = vsel %vm88_vm5, %v79_v53, %v95_v63  ;;  %v100_v3 = vsel %vm88_vm5, %v82_v55, %v99_v0  ;;  %v173_v4 = vshrl.u32 %v617_v33, %v172_v54 }
  0x2e   :  { %v175_v5 = vshrl.u32 %v618_v35, %v172_v54  ;;  %v93_v6 = vsel %vm87_vm3, %v90_v58, %v92_v62  ;;  %v97_v7 = vsel %vm87_vm3, %v94_v60, %v96_v2  ;;  %v101_v8 = vsel %vm87_vm3, %v98_v61, %v100_v3 }
  0x2f   :  { %v178_v12 = vshrl.u32 %v619_v37, %v172_v54  ;;  %v678_v14 = vmul.u32.u64.low %v665_v29, %v101_v8  ;;  %v679_v15 = vmul.u32.u64.high %v665_v29, %v101_v8, %v678_v14  ;;  %v180_v20 = vshll.u32 %v619_v37, %v171_v30 }
  0x30   :  { %v682_v16 = vmul.u32.u64.low %v665_v29, %v97_v7  ;;  %v683_v17 = vmul.u32.u64.high %v665_v29, %v97_v7, %v682_v16  ;;  %v176_v18 = vor.u32 %v175_v5, %v174_v57  ;;  %v181_v21 = vshrl.u32 %v620_v39, %v172_v54 }
  0x31   :  { %v179_v19 = vor.u32 %v178_v12, %v177_v1  ;;  %v183_v22 = vshll.u32 %v620_v39, %v171_v30  ;;  %v184_v23 = vshrl.u32 %v621_v41, %v172_v54  ;;  %v186_v24 = vshll.u32 %v621_v41, %v171_v30 }
  0x32   :  { %v187_v25 = vshrl.u32 %v622_v49, %v172_v54  ;;  %v109_v26 = vmul.u32 %v665_v29, %v93_v6  ;;  %v182_v27 = vor.u32 %v181_v21, %v180_v20  ;;  %vm189_vm6 = vcmp.lt.s32.totalorder %v669_v43, 1 }
  0x33   :  { %vm190_vm7 = vcmp.lt.s32.totalorder %v669_v43, 2  ;;  %vm111_vm8 = vc.u32 %v679_v15, %v682_v16  ;;  %v112_v28 = vadd.s32 1, %v683_v17  ;;  %v185_v32 = vor.u32 %v184_v23, %v183_v22 }
  0x34   :  { %vm191_vm9 = vcmp.lt.s32.totalorder %v669_v43, 3  ;;  %v188_v33 = vor.u32 %v187_v25, %v186_v24  ;;  %vm192_vm10 = vcmp.lt.s32.totalorder %v669_v43, 4  ;;  %v193_v34 = vsel %vm189_vm6, %v173_v4, %v176_v18 }
  0x35   :  { %v197_v30 = vsel %vm189_vm6, %v176_v18, %v179_v19  ;;  %v113_v35 = vsel %vm111_vm8, %v112_v28, %v683_v17  ;;  %v194_v29 = vsel %vm192_vm10, %v182_v27, 2102212464  ;;  %v198_v36 = vsel %vm192_vm10, %v185_v32, 920167782 }
  0x36   :  { %v201_v37 = vsel %vm189_vm6, %v179_v19, %v182_v27  ;;  %v114_v38 = vadd.s32 %v113_v35, %v109_v26  ;;  %v195_v39 = vsel %vm191_vm9, %v179_v19, %v194_v29  ;;  %v199_v40 = vsel %vm191_vm9, %v182_v27, %v198_v36 }
  0x37   :  { %v202_v41 = vsel %vm192_vm10, %v188_v33, 1326507024  ;;  %v196_v42 = vsel %vm190_vm7, %v193_v34, %v195_v39  ;;  %v200_v44 = vsel %vm190_vm7, %v197_v30, %v199_v40  ;;  %v110_v2 = vadd.s32 %v682_v16, %v679_v15 }
  0x38   :  { %v203_v45 = vsel %vm191_vm9, %v185_v32, %v202_v41  ;;  %v115_v46 = vadd.s32 536870912, %v114_v38  ;;  %v700_v48 = vmul.u32.u64.low %v667_v31, %v200_v44  ;;  %v701_v49 = vmul.u32.u64.high %v667_v31, %v200_v44, %v700_v48 }
  0x39   :  { %v204_v47 = vsel %vm190_vm7, %v201_v37, %v203_v45  ;;  %v212_v53 = vmul.u32 %v667_v31, %v196_v42  ;;  %vm146_vm8 = vweird.f32 %v653_v9 }
  0x3a   :  { %v704_v50 = vmul.u32.u64.low %v667_v31, %v204_v47  ;;  %v705_v51 = vmul.u32.u64.high %v667_v31, %v204_v47, %v704_v50  ;;  %v116_v52 = vshrl.u32 %v115_v46, 30  ;;  %v215_v55 = vadd.s32 1, %v701_v49 }
  0x3c   :  { %v117_v54 = vshll.u32 %v116_v52, 30  ;;  %vm214_vm11 = vc.u32 %v705_v51, %v700_v48  ;;  %v213_v22 = vadd.s32 %v700_v48, %v705_v51  ;;  %v140_v27 = vsub.s32 4, %v116_v52 }
  0x3d   :  { %v216_v43 = vsel %vm214_vm11, %v215_v55, %v701_v49 }
  0x3e   :  { %v118_v56 = vsub.s32 %v114_v38, %v117_v54  ;;  %v217_v57 = vadd.s32 %v216_v43, %v212_v53  ;;  %v141_v29 = vsel %vm56_vm14, %v140_v27, %v116_v52 }
  0x3f   :  { %v143_v40 = vsel %vm55_vm15, 0, %v141_v29 }
  0x40   :  { %v120_v58 = vsub.s32 0, %v118_v56  ;;  %v218_v59 = vadd.s32 536870912, %v217_v57  ;;  %v353_v44 = vadd.s32 3, %v143_v40  ;;  %v147_v48 = vand.u32 3, %v143_v40 }
  0x42   :  { %v508_v60 = vmin.u32 %v120_v58, %v118_v56  ;;  %v219_v61 = vshrl.u32 %v218_v59, 30  ;;  %v354_v49 = vand.u32 3, %v353_v44  ;;  %vm152_vm2 = vcmp.eq.s32.totalorder %v147_v48, 2 }
  0x43   :  { %vm149_vm4 = vcmp.eq.s32.totalorder %v147_v48, 0  ;;  %vm148_vm6 = vcmp.lt.s32.totalorder %v147_v48, 2 }
  0x44   :  { %v122_v62 = vclz %v508_v60  ;;  %v220_v63 = vshll.u32 %v219_v61, 30  ;;  %v243_v42 = vsub.s32 4, %v219_v61  ;;  %vm359_vm3 = vcmp.eq.s32.totalorder %v354_v49, 2 }
  0x45   :  { %vm356_vm5 = vcmp.eq.s32.totalorder %v354_v49, 0  ;;  %vm355_vm7 = vcmp.lt.s32.totalorder %v354_v49, 2 }
  0x46   :  { %v509_v0 = vadd.s32 4294967294, %v122_v62  ;;  %v221_v1 = vsub.s32 %v217_v57, %v220_v63  ;;  %v244_v46 = vsel %vm159_vm0, %v243_v42, %v219_v61 }
  0x47   :  { %v246_v50 = vsel %vm158_vm1, 0, %v244_v46 }
  0x48   :  { %vm510_vm12 = vcmp.lt.s32.totalorder %v509_v0, 0  ;;  %v223_v3 = vsub.s32 0, %v221_v1  ;;  %v457_v54 = vadd.s32 3, %v246_v50  ;;  %v250_v59 = vand.u32 3, %v246_v50 }
  0x49   :  { %v125_v31 = vsel %vm510_vm12, 0, %v509_v0 }
  0x4a   :  { %v126_v4 = vsub.s32 32, %v125_v31  ;;  %v127_v5 = vshll.u32 %v118_v56, %v125_v31  ;;  %v130_v6 = vsub.s32 4294967266, %v125_v31  ;;  %v512_v7 = vmin.u32 %v223_v3, %v221_v1 }
  0x4b   :  { %v458_v61 = vand.u32 3, %v457_v54  ;;  %vm255_vm9 = vcmp.eq.s32.totalorder %v250_v59, 2  ;;  %vm252_vm11 = vcmp.eq.s32.totalorder %v250_v59, 0 }
  0x4c   :  { %v128_v8 = vshrl.u32 %v110_v2, %v126_v4  ;;  %v131_v12 = vadd.s32 127, %v130_v6  ;;  %v225_v14 = vclz %v512_v7 }
  0x4d   :  { %vm463_vm10 = vcmp.eq.s32.totalorder %v458_v61, 2  ;;  %vm460_vm12 = vcmp.eq.s32.totalorder %v458_v61, 0 }
  0x4e   :  { %v129_v17 = vor.u32 %v128_v8, %v127_v5  ;;  %v132_v18 = vshll.u32 %v131_v12, 23  ;;  %v513_v19 = vadd.s32 4294967294, %v225_v14 }
  0x50   :  { %v133_v20 = vor.u32 4788187, %v132_v18  ;;  %v136_v21 = vcvt.s32.f32 %v129_v17  ;;  %vm514_vm13 = vcmp.lt.s32.totalorder %v513_v19, 0 }
  0x51   :  { %v228_v15 = vsel %vm514_vm13, 0, %v513_v19  ;;  %vm251_vm13 = vcmp.lt.s32.totalorder %v250_v59, 2 }
  0x52   :  { %v134_v23 = vand.u32 2147483647, %v133_v20  ;;  %v229_v16 = vsub.s32 32, %v228_v15  ;;  %v230_v24 = vshll.u32 %v221_v1, %v228_v15  ;;  %v233_v25 = vsub.s32 4294967266, %v228_v15 }
  0x54   :  { %v137_v26 = vmul.f32 %v136_v21, %v134_v23  ;;  %v231_v28 = vshrl.u32 %v213_v22, %v229_v16  ;;  %v234_v32 = vadd.s32 127, %v233_v25 }
  0x56   :  { %v138_v33 = vxor.u32 2147483648, %v137_v26  ;;  %v232_v34 = vor.u32 %v231_v28, %v230_v24  ;;  %v235_v30 = vshll.u32 %v234_v32, 23 }
  0x58   :  { %v139_v35 = vsel %vm56_vm14, %v138_v33, %v137_v26  ;;  %v236_v37 = vor.u32 4788187, %v235_v30  ;;  %v239_v38 = vcvt.s32.f32 %v232_v34  ;;  %vm459_vm14 = vcmp.lt.s32.totalorder %v458_v61, 2 }
  0x59   :  { %v142_v36 = vsel %vm55_vm15, %v653_v9, %v139_v35  ;;  %vm249_vm15 = vweird.f32 %v655_v10 }
  0x5a   :  { %542 = vcosq.f32 %v142_v36  ;;  %v237_v39 = vand.u32 2147483647, %v236_v37 }
  0x5b   :  { %544 = vsinq.f32 %v142_v36 }
  0x5c   :  { %v240_v41 = vmul.f32 %v239_v38, %v237_v39 }
  0x5e   :  { %v241_v11 = vxor.u32 2147483648, %v240_v41 }
  0x60   :  { %v242_v45 = vsel %vm159_vm0, %v241_v11, %v240_v41 }
  0x61   :  { %v245_v47 = vsel %vm158_vm1, %v655_v10, %v242_v45 }
  0x62   :  { %546 = vcosq.f32 %v245_v47 }
  0x63   :  { %548 = vsinq.f32 %v245_v47 }
  0x67   :  { %v543_v51 = vpop.eup %542 }
  0x68   :  { %v545_v52 = vpop.eup %544  ;;  %v153_v53 = vxor.u32 2147483648, %v543_v51 }
  0x69   :  { %v150_v13 = vxor.u32 2147483648, %v545_v52 }
  0x6a   :  { %v154_v55 = vsel %vm152_vm2, %v153_v53, %v545_v52  ;;  %v361_v56 = vsel %vm359_vm3, %v153_v53, %v545_v52 }
  0x6b   :  { %v151_v43 = vsel %vm149_vm4, %v543_v51, %v150_v13  ;;  %v358_v57 = vsel %vm356_vm5, %v543_v51, %v150_v13 }
  0x6c   :  { %v155_v58 = vsel %vm148_vm6, %v151_v43, %v154_v55  ;;  %v362_v60 = vsel %vm355_vm7, %v358_v57, %v361_v56 }
  0x6d   :  { %v156_v62 = vsel %vm146_vm8, nan, %v155_v58  ;;  %v363_v63 = vsel %vm146_vm8, nan, %v362_v60 }
  0x6e   :  { %468 = vst [vmem:[#allocation5] sm:$0xff] %v156_v62  ;;  %470 = vst [vmem:[#allocation6] sm:$0xff] %v363_v63 }
  0x6f   :  { %v547_v0 = vpop.eup %546 }
  0x70   :  { %v549_v1 = vpop.eup %548  ;;  %v256_v2 = vxor.u32 2147483648, %v547_v0 }
  0x71   :  { %v253_v9 = vxor.u32 2147483648, %v549_v1 }
  0x72   :  { %v257_v31 = vsel %vm255_vm9, %v256_v2, %v549_v1  ;;  %v465_v3 = vsel %vm463_vm10, %v256_v2, %v549_v1 }
  0x73   :  { %v254_v4 = vsel %vm252_vm11, %v547_v0, %v253_v9  ;;  %v462_v5 = vsel %vm460_vm12, %v547_v0, %v253_v9 }
  0x74   :  { %v258_v6 = vsel %vm251_vm13, %v254_v4, %v257_v31  ;;  %v466_v7 = vsel %vm459_vm14, %v462_v5, %v465_v3 }
  0x75   :  { %v259_v8 = vsel %vm249_vm15, nan, %v258_v6  ;;  %v467_v12 = vsel %vm249_vm15, nan, %v466_v7 }
  0x76   :  { %469 = vst [vmem:[#allocation5 + $0x8] sm:$0xff] %v259_v8  ;;  %471 = vst [vmem:[#allocation6 + $0x8] sm:$0xff] %v467_v12 }
  0x77   :  { %581 = shalt.err (!%p578_p9)
}
  0x78   :  { %s625_s23 = smov 128   ;;  %s626_s24 = smov 8  }
  0x79   :  { %483 = dma.vmem_to_hbm [thread:$0]  %s478_s1, 256, %s731_s2, [#allocation4], %s625_s23, %s625_s23, %s626_s24  }
  0x7a   :  { %s590_s27 = scalar_lea.vmem %s490_s21, 256  ;;  %p595_p11 = scmp.lt.s32.totalorder %s490_s21, %s490_s21 }
  0x7b   :  { %p591_p10 = scmp.ne.s32.totalorder %s490_s21, %s590_s27  ;;  %p596_p12 = scmp.lt.s32.totalorder %s590_s27, %s590_s27 }
  0x7d   :  { %p597_p13 = por %p596_p12, %p595_p11 }
  0x7f   :  { %p598_p0 = pnand %p597_p13, %p591_p10 }
  0x81   :  { %601 = shalt.err (!%p598_p0)
}
  0x82   :  { %495 = dma.vmem_to_hbm [thread:$0]  %s490_s21, 256, %s732_s3, [#allocation7], %s625_s23, %s625_s23, %s626_s24  }
  0x83   :  { %612 = dma.done.wait [#allocation4], 256  }
  0x84   :  { %613 = vsyncadd [#allocation4], 4294967040 }
  0x85   :  { %614 = dma.done.wait [#allocation7], 256  }
  0x86   :  { %615 = vsyncadd [#allocation7], 4294967040 }
  0x87   :  { %502 = vsyncpa [#allocation3], 1 }
  0x88   :  { %503 = vsyncpa [#allocation4], 1 }
  0x89   :  { %504 = vsyncpa [#allocation7], 1 }

</bundles_post_ra>
